<compile_context>
chip_gen: v7x
topology: tpu7x:2x2x1
jax: 0.10.0
libtpu: 0.0.40
codegen_flags: <defaults>
</compile_context>

<pallas_src>
import functools

import jax
import jax.numpy as jnp
from jax import lax
from jax.experimental import pallas as pl
from jax.experimental.pallas import tpu as pltpu


def _round_up(x, m):
    return ((x + m - 1) // m) * m


def cluster_kernel(x_ref, c_ref, c_sq_ref, o_ref, *, alpha):
    """One N-tile: (TILE_N, D) rows of x against all (K, D) centers."""
    x = x_ref[...].astype(jnp.float32)            # (Tn, D)  streamed
    c = c_ref[...].astype(jnp.float32)            # (K, D)   resident
    c_sq = c_sq_ref[...]                          # (1, K)   resident, hoisted

    x_sq = jnp.sum(x * x, axis=-1, keepdims=True)              # (Tn, 1)

    # x @ c^T via dot_general contracting the feature axis of both operands
    # (no explicit transpose of `c` in VMEM).
    cross = lax.dot_general(
        x, c,
        dimension_numbers=(((1,), (1,)), ((), ())),
        preferred_element_type=jnp.float32,
    )                                                          # (Tn, K)

    # ||x - c||^2 >= 0; clamp fp cancellation error from the expansion.
    square_dist = jnp.maximum(x_sq + c_sq - 2.0 * cross, 0.0)  # (Tn, K)

    base = 1.0 + square_dist * (1.0 / alpha)                   # base >= 1
    power = -(alpha + 1.0) / 2.0
    if power == -1.0:
        # DEC default alpha=1: single (exact) reciprocal instead of log+exp.
        nom = pl.reciprocal(base)
    elif power == -0.5:
        nom = lax.rsqrt(base)
    elif power == round(power) and -8.0 <= power < 0.0:
        nom = lax.integer_pow(pl.reciprocal(base), int(-power))
    else:
        nom = jnp.exp(power * jnp.log(base))                   # generic alpha

    denom = jnp.sum(nom, axis=1, keepdims=True)                # (Tn, 1)
    o_ref[...] = (nom * pl.reciprocal(denom)).astype(o_ref.dtype)


def cluster_forward(x, center, alpha, *, tile_n=4096, vmem_budget_bytes=24 << 20):
    N, D = x.shape
    K, Dc = center.shape
    assert D == Dc, "feature dims of x and center must match"

    xf = x.astype(jnp.float32)
    cf = center.astype(jnp.float32)

    # Hoist grid-invariant ||c||^2 as a (1, K) lane row.
    c_sq = jnp.sum(cf * cf, axis=-1, keepdims=True).T          # (1, K)

    # ---- N-tile selection -------------------------------------------------
    d_lanes = _round_up(D, 128)
    k_lanes = _round_up(K, 128)
    # Double-buffered streamed tiles (x in + out out), f32, lane-padded.
    per_row_bytes = 2 * 4 * (d_lanes + k_lanes)
    max_tile_vmem = max(8, ((vmem_budget_bytes // per_row_bytes) // 8) * 8)
    # Cap at ceil(N/2) so we get >= 2 grid steps (megacore sharding on v7x,
    # real double-buffering) whenever N is big enough to split.
    half_n = max(8, _round_up(pl.cdiv(N, 2), 8))
    tile_n = max(8, min(tile_n, max_tile_vmem, half_n))

    grid = (pl.cdiv(N, tile_n),)

    # Explicit VMEM budget: streamed tiles + resident centers + headroom,
    # kept <= 32 MiB so it is valid on every generation (v5e..v7x).
    center_bytes = 2 * 4 * _round_up(K, 8) * d_lanes
    vmem_limit = int(min(32 << 20,
                         max(4 << 20,
                             per_row_bytes * tile_n + center_bytes + (2 << 20))))

    kernel = functools.partial(cluster_kernel, alpha=float(alpha))

    out = pl.pallas_call(
        kernel,
        out_shape=jax.ShapeDtypeStruct((N, K), jnp.float32),
        grid=grid,
        in_specs=[
            pl.BlockSpec((tile_n, D), lambda i: (i, 0)),   # x: streamed over N
            pl.BlockSpec((K, D), lambda i: (0, 0)),        # centers: resident
            pl.BlockSpec((1, K), lambda i: (0, 0)),        # ||c||^2: resident
        ],
        out_specs=pl.BlockSpec((tile_n, K), lambda i: (i, 0)),
        compiler_params=pltpu.CompilerParams(
            dimension_semantics=("parallel",),             # megacore / v7x 2-TC
            vmem_limit_bytes=vmem_limit,
        ),
        cost_estimate=pl.CostEstimate(
            flops=2 * N * K * D,
            transcendentals=N * K,
            bytes_accessed=4 * (N * D + K * D + N * K),
        ),
    )(xf, cf, c_sq)

    return out


def cluster_reference(x, center, alpha):
    """Pure-JAX reference mirroring the PyTorch forward exactly."""
    square_dist = jnp.sum((x[:, None, :] - center[None, :, :]) ** 2, axis=2)
    nom = jnp.power(1.0 + square_dist / alpha, -(alpha + 1.0) / 2.0)
    denom = jnp.sum(nom, axis=1, keepdims=True)
    return nom / denom


def _check(x, center, alpha, atol=1e-4, rtol=1e-4):
    out = jax.block_until_ready(cluster_forward(x, center, alpha))
    ref = cluster_reference(x, center, alpha)
    assert out.shape == ref.shape
    assert jnp.allclose(out, ref, atol=atol, rtol=rtol), (
        f"alpha={alpha}: max abs err {jnp.max(jnp.abs(out - ref))}"
    )
    assert jnp.allclose(jnp.sum(out, axis=1), 1.0, atol=atol)
    return out


if __name__ == "__main__":
    key = jax.random.PRNGKey(0)
    kx, kc, kx2, kc2 = jax.random.split(key, 4)

    # Small, module-consistent shapes: (N, D) samples, (K, D) cluster centers.
    N, K, D = 8, 16, 32
    x = jax.random.normal(kx, (N, D), dtype=jnp.float32)
    center = jax.random.normal(kc, (K, D), dtype=jnp.float32)

    _check(x, center, alpha=1.0)      # DEC default: reciprocal fast path
    _check(x, center, alpha=3.0)      # integer-power path

    # Ragged shapes: exercise the partial last N-block and K not multiple of 128.
    x2 = jax.random.normal(kx2, (300, D), dtype=jnp.float32)
    center2 = jax.random.normal(kc2, (10, D), dtype=jnp.float32)
    _check(x2, center2, alpha=1.0)

    print("KERNEL_OK")
</pallas_src>

<mosaic_0001>
module attributes {stable_mosaic.version = 11 : i64} {
  func.func @cluster_kernel(%arg0: i32, %arg1: memref<8x32xf32, #tpu.memory_space<vmem>>, %arg2: memref<16x32xf32, #tpu.memory_space<vmem>>, %arg3: memref<1x16xf32, #tpu.memory_space<vmem>>, %arg4: memref<8x16xf32, #tpu.memory_space<vmem>>) attributes {dimension_semantics = [#tpu.dimension_semantics<parallel>], iteration_bounds = array<i64: 1>, scalar_prefetch = 0 : i64, scratch_operands = 0 : i64, tpu.core_type = #tpu.core_type<tc>, window_params = [{transform_indices = @transform_0, window_bounds = array<i64: 8, 32>}, {pipeline_mode = #tpu.pipeline_mode<synchronous>, transform_indices = @transform_1, window_bounds = array<i64: 16, 32>}, {pipeline_mode = #tpu.pipeline_mode<synchronous>, transform_indices = @transform_2, window_bounds = array<i64: 1, 16>}, {transform_indices = @transform_3, window_bounds = array<i64: 8, 16>}]} {
    %c0 = arith.constant 0 : index
    %c0_0 = arith.constant 0 : index
    %0 = vector.load %arg1[%c0, %c0_0] : memref<8x32xf32, #tpu.memory_space<vmem>>, vector<8x32xf32>
    %c0_1 = arith.constant 0 : index
    %c0_2 = arith.constant 0 : index
    %1 = vector.load %arg2[%c0_1, %c0_2] : memref<16x32xf32, #tpu.memory_space<vmem>>, vector<16x32xf32>
    %c0_3 = arith.constant 0 : index
    %c0_4 = arith.constant 0 : index
    %2 = vector.load %arg3[%c0_3, %c0_4] : memref<1x16xf32, #tpu.memory_space<vmem>>, vector<1x16xf32>
    %3 = arith.mulf %0, %0 : vector<8x32xf32>
    %cst = arith.constant dense<0.000000e+00> : vector<8xf32>
    %4 = vector.multi_reduction <add>, %3, %cst [1] : vector<8x32xf32> to vector<8xf32>
    %5 = vector.shape_cast %4 : vector<8xf32> to vector<8x1xf32>
    %cst_5 = arith.constant dense<0.000000e+00> : vector<8x16xf32>
    %6 = tpu.matmul %0, %1, %cst_5 {dimension_numbers = #tpu.dot_dimension_numbers<[1], [1], [0], [0], [0, 0, 1, 0], [], []>} : vector<8x32xf32>, vector<16x32xf32>, vector<8x16xf32> -> vector<8x16xf32>
    %7 = vector.broadcast %5 : vector<8x1xf32> to vector<8x16xf32>
    %8 = vector.broadcast %2 : vector<1x16xf32> to vector<8x16xf32>
    %9 = arith.addf %7, %8 : vector<8x16xf32>
    %cst_6 = arith.constant 2.000000e+00 : f32
    %10 = vector.broadcast %cst_6 : f32 to vector<8x16xf32>
    %11 = arith.mulf %10, %6 : vector<8x16xf32>
    %12 = arith.subf %9, %11 : vector<8x16xf32>
    %cst_7 = arith.constant 0.000000e+00 : f32
    %13 = vector.broadcast %cst_7 : f32 to vector<8x16xf32>
    %14 = arith.maximumf %12, %13 : vector<8x16xf32>
    %cst_8 = arith.constant 1.000000e+00 : f32
    %15 = vector.broadcast %cst_8 : f32 to vector<8x16xf32>
    %16 = arith.mulf %14, %15 : vector<8x16xf32>
    %cst_9 = arith.constant 1.000000e+00 : f32
    %17 = vector.broadcast %cst_9 : f32 to vector<8x16xf32>
    %18 = arith.addf %17, %16 : vector<8x16xf32>
    %19 = tpu.reciprocal %18 : vector<8x16xf32> -> vector<8x16xf32>
    %cst_10 = arith.constant dense<0.000000e+00> : vector<8xf32>
    %20 = vector.multi_reduction <add>, %19, %cst_10 [1] : vector<8x16xf32> to vector<8xf32>
    %21 = vector.shape_cast %20 : vector<8xf32> to vector<8x1xf32>
    %22 = tpu.reciprocal %21 : vector<8x1xf32> -> vector<8x1xf32>
    %23 = vector.broadcast %22 : vector<8x1xf32> to vector<8x16xf32>
    %24 = arith.mulf %19, %23 : vector<8x16xf32>
    %c0_11 = arith.constant 0 : index
    %c0_12 = arith.constant 0 : index
    %25 = vector.load %arg4[%c0_11, %c0_12] : memref<8x16xf32, #tpu.memory_space<vmem>>, vector<8x16xf32>
    tpu.vector_store %arg4[%c0_11, %c0_12], %24 {strides = array<i32>} : memref<8x16xf32, #tpu.memory_space<vmem>>, vector<8x16xf32>,
    return
  }
  func.func @transform_0(%arg0: i32) -> (i32, i32) {
    %c0_i32 = arith.constant 0 : i32
    %c0_i32_0 = arith.constant 0 : i32
    return %arg0, %c0_i32 : i32, i32
  }
  func.func @transform_1(%arg0: i32) -> (i32, i32) {
    %c0_i32 = arith.constant 0 : i32
    %c0_i32_0 = arith.constant 0 : i32
    %c0_i32_1 = arith.constant 0 : i32
    return %c0_i32, %c0_i32_0 : i32, i32
  }
  func.func @transform_2(%arg0: i32) -> (i32, i32) {
    %c0_i32 = arith.constant 0 : i32
    %c0_i32_0 = arith.constant 0 : i32
    %c0_i32_1 = arith.constant 0 : i32
    return %c0_i32, %c0_i32_0 : i32, i32
  }
  func.func @transform_3(%arg0: i32) -> (i32, i32) {
    %c0_i32 = arith.constant 0 : i32
    %c0_i32_0 = arith.constant 0 : i32
    return %arg0, %c0_i32 : i32, i32
  }
}

</mosaic_0001>

<bundles_post_ra>
// kernel: tpu_custom_call.1
= control target key start
LH: loop header
LB: loop body
LE: loop exit
PB: predicated region body
PF: predicated region fallthrough
CT: control target
= control target key end

     0   :  { %8 = vsyncpa [#allocation3], 0  ;;  %s340_s0 = inlined_call_operand.hbm [shape: f32[8,32], index: 0, kind: input, shape index: {}]   ;;  %s341_s1 = inlined_call_operand.hbm [shape: f32[16,32], index: 1, kind: input, shape index: {}]   ;;  %s342_s2 = inlined_call_operand.vmem [shape: f32[1,16], index: 2, kind: input, shape index: {}]   ;;  %s343_s3 = inlined_call_operand.hbm [shape: f32[8,16], index: 3, kind: output, shape index: {}]  }
   0x1   :  { %9 = vsyncpa [#allocation6], 0 }
   0x2   :  { %10 = vsyncpa [#allocation4], 0  ;;  %s266_s12 = smov [#allocation2]   ;;  %s267_s14 = smov [#allocation5]  }
   0x3   :  { %s17_s13 = sshll.u32 %s266_s12, 4  ;;  %s26_s15 = sshll.u32 %s267_s14, 4  ;;  %s18_s13 = int_to_ptr.vmem [resolvable:$true] %s17_s13  ;;  %s294_s15 = int_to_ptr.vmem [resolvable:$true] %s26_s15 }
   0x4   :  { %s194_s18 = scalar_lea.hbm %s340_s0, 128 }
   0x5   :  { %p195_p0 = scmp.ne.s32.totalorder %s340_s0, %s194_s18  ;;  %p198_p1 = scmp.lt.u32.totalorder %s194_s18, %s340_s0 }
   0x7   :  { %p200_p2 = pnand %p198_p1, %p195_p0 }
   0x9   :  { %203 = shalt.err (!%p200_p2)
}
   0xa   :  { %s204_s23 = scalar_lea.vmem %s18_s13, 128  ;;  %p209_p4 = scmp.lt.s32.totalorder %s18_s13, %s18_s13 }
   0xb   :  { %p205_p3 = scmp.ne.s32.totalorder %s18_s13, %s204_s23  ;;  %p210_p5 = scmp.lt.s32.totalorder %s204_s23, %s204_s23 }
   0xd   :  { %p211_p6 = por %p210_p5, %p209_p4 }
   0xf   :  { %p212_p7 = pnand %p211_p6, %p205_p3 }
  0x11   :  { %215 = shalt.err (!%p212_p7)
}
  0x12   :  { %20 = dma.hbm_to_vmem [thread:$0]  %s340_s0, 128, %s18_s13, [#allocation3]  }
  0x13   :  { %s216_s28 = scalar_lea.hbm %s341_s1, 256 }
  0x14   :  { %p217_p8 = scmp.ne.s32.totalorder %s341_s1, %s216_s28  ;;  %p220_p9 = scmp.lt.u32.totalorder %s216_s28, %s341_s1 }
  0x16   :  { %p222_p10 = pnand %p220_p9, %p217_p8 }
  0x18   :  { %225 = shalt.err (!%p222_p10)
}
  0x19   :  { %s226_s6 = scalar_lea.vmem %s294_s15, 256  ;;  %p231_p12 = scmp.lt.s32.totalorder %s294_s15, %s294_s15 }
  0x1a   :  { %p227_p11 = scmp.ne.s32.totalorder %s294_s15, %s226_s6  ;;  %p232_p13 = scmp.lt.s32.totalorder %s226_s6, %s226_s6 }
  0x1c   :  { %p233_p0 = por %p232_p13, %p231_p12 }
  0x1e   :  { %p234_p1 = pnand %p233_p0, %p227_p11 }
  0x20   :  { %237 = shalt.err (!%p234_p1)
}
  0x21   :  { %s268_s0 = smov 128   ;;  %s269_s7 = smov 8  }
  0x22   :  { %32 = dma.hbm_to_vmem [thread:$0]  %s341_s1, 256, %s294_s15, [#allocation6], %s268_s0, %s268_s0, %s269_s7  }
  0x23   :  { %260 = dma.done.wait [#allocation3], 128  }
  0x24   :  { %261 = vsyncadd [#allocation3], 4294967168 }
  0x25   :  { %262 = dma.done.wait [#allocation6], 256  }
  0x26   :  { %263 = vsyncadd [#allocation6], 4294967040  ;;  %v270_v0 = vmov 0.0|0.0   ;;  %vm271_vm0 = vmmov 0   ;;  %v272_v1 = vmov 0.0   ;;  %vm46_vm1 = vcmask 261120  }
  0x27   :  { %178 = vmatprep.subr.bf16.mxu0 %v270_v0  ;;  %175 = vmatprep.mubr.msk.f32.mxu0 %vm271_vm0, %v272_v1  ;;  %vm180_vm2 = vmpackc.low %vm46_vm1, %vm46_vm1  ;;  %v42_v2 = vld [vmem:[#allocation5] sm:$0xff]  ;;  %v43_v3 = vld [vmem:[#allocation5 + $0x8] sm:$0xff]  ;;  %vm141_vm3 = vcmask 130048   ;;  %s273_s11 = smov [#allocation7]  }
  0x28   :  { %v41_v4 = vld [vmem:[#allocation2] sm:$0xff]  ;;  %v179_v5 = vpack.c.bf16 %v43_v3, %v42_v2  ;;  %s154_s12 = sshll.u32 %s273_s11, 4  ;;  %s155_s12 = int_to_ptr.vmem [resolvable:$true] %s154_s12 }
  0x29   :  { %v45_v6 = vmul.f32 %v41_v4, %v41_v4  ;;  %v167_v8 = vld [vmem:[%s342_s2] ss:$0 sm:$0xff]  ;;  %s238_s2 = scalar_lea.vmem %s155_s12, 128  ;;  %p243_p3 = scmp.lt.s32.totalorder %s155_s12, %s155_s12 }
  0x2a   :  { %181 = vmatpush3.bf16.xpose.msk.msra.mxu0 %vm180_vm2, %v179_v5  ;;  %p239_p2 = scmp.ne.s32.totalorder %s155_s12, %s238_s2  ;;  %p244_p4 = scmp.lt.s32.totalorder %s238_s2, %s238_s2 }
  0x2b   :  { %v47_v7 = vsel %vm46_vm1, %v45_v6, 0.0 }
  0x2c   :  { %48 = vadd.xlane.f32.xlu0 %v47_v7  ;;  %p245_p5 = por %p244_p4, %p243_p3 }
  0x2e   :  { %p246_p6 = pnand %p245_p5, %p239_p2 }
  0x31   :  { %176 = vmatmul.mubr.msk.f32.vlgmr.msra.gmra.mrb[0].mxu0 %vm46_vm1, %v41_v4 }
  0xb9   :  { %v49_v9 = vpop.xlane.xlu0 %48 }
  0xba   :  { %v135_v10 = vadd.f32 %v167_v8, %v49_v9 }
 0x104   :  { %v125_v11 = vpop.f32.mrb[0].mxu0 }
 0x105   :  { %v136_v12 = vmul.f32 2.0, %v125_v11  ;;  %v177_v13 = vpop.f32.mrb[1].mxu0 }
 0x107   :  { %v137_v14 = vsub.f32 %v135_v10, %v136_v12 }
 0x109   :  { %v138_v15 = vmax.f32 %v137_v14, 0.0 }
 0x10b   :  { %v139_v16 = vadd.f32 1.0, %v138_v15 }
 0x10d   :  { %190 = vrcp.f32 %v139_v16 }
 0x117   :  { %v191_v17 = vpop.eup %190 }
 0x118   :  { %v142_v18 = vsel %vm141_vm3, %v191_v17, 0.0 }
 0x119   :  { %143 = vadd.xlane.f32.xlu0 %v142_v18 }
 0x1a6   :  { %v144_v19 = vpop.xlane.xlu0 %143 }
 0x1a7   :  { %192 = vrcp.f32 %v144_v19 }
 0x1b1   :  { %v193_v20 = vpop.eup %192 }
 0x1b2   :  { %v146_v21 = vmul.f32 %v193_v20, %v191_v17 }
 0x1b4   :  { %147 = vst.msk [vmem:[#allocation7] sm:$0xff] %vm141_vm3, %v146_v21 }
 0x1b5   :  { %249 = shalt.err (!%p246_p6)
}
 0x1b6   :  { %s250_s15 = scalar_lea.hbm %s343_s3, 128 }
 0x1b7   :  { %p251_p7 = scmp.ne.s32.totalorder %s343_s3, %s250_s15  ;;  %p254_p8 = scmp.lt.u32.totalorder %s250_s15, %s343_s3 }
 0x1b9   :  { %p256_p9 = pnand %p254_p8, %p251_p7 }
 0x1bb   :  { %259 = shalt.err (!%p256_p9)
}
 0x1bc   :  { %157 = dma.vmem_to_hbm [thread:$0]  %s155_s12, 128, %s343_s3, [#allocation4]  }
 0x1bd   :  { %264 = dma.done.wait [#allocation4], 128  }
 0x1be   :  { %265 = vsyncadd [#allocation4], 4294967168 }
 0x1bf   :  { %161 = vsyncpa [#allocation3], 1 }
 0x1c0   :  { %162 = vsyncpa [#allocation6], 1 }
 0x1c1   :  { %163 = vsyncpa [#allocation4], 1 }

</bundles_post_ra>
